<compile_context>
chip_gen: v7x
topology: tpu7x:2x2x1
jax: 0.10.0
libtpu: 0.0.40
codegen_flags: <defaults>
</compile_context>

<pallas_src>
import jax
import jax.numpy as jnp
from jax.experimental import pallas as pl
from jax.experimental.pallas import tpu as pltpu

STATE_DIM = 8
HIDDEN = 64
ACTION_DIM = 4   # env.action_space.n (synthetic small value)
LANE = 128       # hidden / output feature dims are lane-padded to 128

# Row offsets of each lane-padded weight matrix inside the packed W slab.
_W1_OFF = 0
_W2_OFF = _W1_OFF + STATE_DIM   # 8
_W3_OFF = _W2_OFF + LANE        # 136
_W_ROWS = _W3_OFF + LANE        # 264


def _round_up(x, m):
    return (x + m - 1) // m * m


def dqn_kernel(x_ref, w_ref, b_ref, out_ref):
    # x tile: (TILE_B, STATE_DIM).  Accept f32 or bf16 input; compute in f32
    # (exact module semantics, f32 MXU operands + f32 accumulate).
    x = x_ref[...].astype(jnp.float32)

    w1 = w_ref[_W1_OFF:_W1_OFF + STATE_DIM, :]   # (8, 128)
    w2 = w_ref[_W2_OFF:_W2_OFF + LANE, :]        # (128, 128)
    w3 = w_ref[_W3_OFF:_W3_OFF + LANE, :]        # (128, 128)

    # Layer 1 + ReLU.  Padded lanes (cols 64..127) are exactly zero
    # (zero-padded weights/biases, ReLU(0) = 0) so they stay zero downstream.
    h1 = jnp.dot(x, w1, preferred_element_type=jnp.float32)
    h1 = jnp.maximum(h1 + b_ref[0:1, :], 0.0)

    # Layer 2 + ReLU.
    h2 = jnp.dot(h1, w2, preferred_element_type=jnp.float32)
    h2 = jnp.maximum(h2 + b_ref[1:2, :], 0.0)

    # Layer 3: full-lane MXU matmul, but bias-add + store only the live
    # ACTION_DIM columns -> narrow (batch, ACTION_DIM) HBM writeback.
    out = jnp.dot(h2, w3, preferred_element_type=jnp.float32)
    out_ref[...] = (out[:, :ACTION_DIM]
                    + b_ref[2:3, :ACTION_DIM]).astype(out_ref.dtype)


def init_params(key):
    """PyTorch-style uniform(-1/sqrt(fan_in), 1/sqrt(fan_in)) init, f32,
    stored as [in_features, out_features] (transposed vs. nn.Linear)."""
    def linear(key, fan_in, fan_out):
        kw, kb = jax.random.split(key)
        bound = 1.0 / jnp.sqrt(float(fan_in))
        w = jax.random.uniform(kw, (fan_in, fan_out), jnp.float32, -bound, bound)
        b = jax.random.uniform(kb, (1, fan_out), jnp.float32, -bound, bound)
        return w, b

    k1, k2, k3 = jax.random.split(key, 3)
    w1, b1 = linear(k1, STATE_DIM, HIDDEN)
    w2, b2 = linear(k2, HIDDEN, HIDDEN)
    w3, b3 = linear(k3, HIDDEN, ACTION_DIM)
    return (w1, b1, w2, b2, w3, b3)


def pack_params(params):
    """One-time packing: zero-pad feature dims to 128 lanes and concatenate
    the three weight matrices / three biases into single resident slabs
    (fewer DMA chains, fetched once thanks to the constant index_map)."""
    w1, b1, w2, b2, w3, b3 = params

    def pad(a, rows, cols):
        return jnp.pad(a, ((0, rows - a.shape[0]), (0, cols - a.shape[1])))

    w_packed = jnp.concatenate(
        [pad(w1, STATE_DIM, LANE), pad(w2, LANE, LANE), pad(w3, LANE, LANE)],
        axis=0).astype(jnp.float32)                      # (264, 128) f32
    b_packed = jnp.concatenate(
        [pad(b1, 1, LANE), pad(b2, 1, LANE), pad(b3, 1, LANE)],
        axis=0).astype(jnp.float32)                      # (3, 128) f32
    return w_packed, b_packed


def _choose_tiling(batch, tile_b):
    """Pick (tile_b, padded_batch). Multiple of 8 sublanes; >= 2 grid steps
    when batch is big enough (so v7x megacore actually splits the batch);
    cap at 2048 rows so big replay batches still pipeline; bounded padding."""
    padded = _round_up(max(batch, 1), 8)
    if tile_b is None:
        if padded < 16:
            tile_b = padded                      # tiny batch: single step
        else:
            max_tile = 2048
            n_tiles = max(2, pl.cdiv(padded, max_tile))
            tile_b = _round_up(pl.cdiv(padded, n_tiles), 8)
    padded = _round_up(padded, tile_b)
    return tile_b, padded


def dqn_forward(x, packed_params, *, tile_b=None):
    """Fused 3-layer MLP forward. x: [batch, STATE_DIM] -> [batch, ACTION_DIM].

    Note: at tiny batch (single-env action selection) this is launch-bound and
    a plain jnp forward is just as fast; the tiling targets replay batches.
    """
    w_packed, b_packed = packed_params
    batch = x.shape[0]

    tile_b, padded_batch = _choose_tiling(batch, tile_b)
    if padded_batch != batch:
        x = jnp.pad(x, ((0, padded_batch - batch), (0, 0)))

    grid = (padded_batch // tile_b,)

    flops = 2 * padded_batch * (STATE_DIM * LANE + LANE * LANE + LANE * LANE)
    bytes_accessed = (
        padded_batch * STATE_DIM * x.dtype.itemsize   # x stream
        + padded_batch * ACTION_DIM * 4               # narrow f32 output
        + _W_ROWS * LANE * 4                          # resident weights (once)
        + 3 * LANE * 4                                # resident biases (once)
    )

    out = pl.pallas_call(
        dqn_kernel,
        out_shape=jax.ShapeDtypeStruct((padded_batch, ACTION_DIM), jnp.float32),
        grid=grid,
        in_specs=[
            pl.BlockSpec((tile_b, STATE_DIM), lambda i: (i, 0)),  # x (pipelined)
            pl.BlockSpec((_W_ROWS, LANE), lambda i: (0, 0)),      # weights (resident)
            pl.BlockSpec((3, LANE), lambda i: (0, 0)),            # biases (resident)
        ],
        out_specs=pl.BlockSpec((tile_b, ACTION_DIM), lambda i: (i, 0)),
        compiler_params=pltpu.CompilerParams(
            dimension_semantics=("parallel",),   # megacore sharding on v7x
        ),
        cost_estimate=pl.CostEstimate(
            flops=flops, transcendentals=0, bytes_accessed=bytes_accessed),
    )(x, w_packed, b_packed)

    return out[:batch]


def dqn_reference(x, params):
    """Pure-JAX f32 reference with full-precision matmuls (module semantics)."""
    w1, b1, w2, b2, w3, b3 = params
    hp = jax.lax.Precision.HIGHEST
    h1 = jnp.maximum(jnp.dot(x, w1, precision=hp) + b1, 0.0)
    h2 = jnp.maximum(jnp.dot(h1, w2, precision=hp) + b2, 0.0)
    return jnp.dot(h2, w3, precision=hp) + b3


if __name__ == "__main__":
    key = jax.random.PRNGKey(0)
    k_params, k_x = jax.random.split(key)

    params = init_params(k_params)
    packed = pack_params(params)

    # Small deterministic example consistent with the module: batch=2, state=8.
    batch = 2
    x = jax.random.normal(k_x, (batch, STATE_DIM), jnp.float32)

    out = jax.block_until_ready(dqn_forward(x, packed))
    assert out.shape == (batch, ACTION_DIM)
    ref = dqn_reference(x, params)
    # Kernel runs f32 MXU matmuls; agreement is ~1e-6 in practice.  Tolerance
    # left loose enough to cover any MXU pass-count choice by the compiler.
    assert jnp.allclose(out, ref, atol=2e-2, rtol=2e-2)

    # Multi-step grid with uneven batch: 200 -> tile_b=104, grid=(2,)
    # (exercises padding, resident params, and the >=2-step v7x split).
    batch2 = 200
    x2 = jax.random.normal(k_x, (batch2, STATE_DIM), jnp.float32)
    out2 = jax.block_until_ready(dqn_forward(x2, packed))
    assert out2.shape == (batch2, ACTION_DIM)
    assert jnp.allclose(out2, dqn_reference(x2, params), atol=2e-2, rtol=2e-2)

    # Explicit small tile override: grid=(4,) with batch padding to 256.
    out3 = jax.block_until_ready(dqn_forward(x2, packed, tile_b=64))
    assert out3.shape == (batch2, ACTION_DIM)
    assert jnp.allclose(out3, dqn_reference(x2, params), atol=2e-2, rtol=2e-2)

    print("KERNEL_OK")
</pallas_src>

<mosaic_0001>
module attributes {stable_mosaic.version = 11 : i64} {
  func.func @dqn_kernel(%arg0: i32, %arg1: memref<8x8xf32, #tpu.memory_space<vmem>>, %arg2: memref<264x128xf32, #tpu.memory_space<vmem>>, %arg3: memref<3x128xf32, #tpu.memory_space<vmem>>, %arg4: memref<8x4xf32, #tpu.memory_space<vmem>>) attributes {dimension_semantics = [#tpu.dimension_semantics<parallel>], iteration_bounds = array<i64: 1>, scalar_prefetch = 0 : i64, scratch_operands = 0 : i64, tpu.core_type = #tpu.core_type<tc>, window_params = [{transform_indices = @transform_0, window_bounds = array<i64: 8, 8>}, {pipeline_mode = #tpu.pipeline_mode<synchronous>, transform_indices = @transform_1, window_bounds = array<i64: 264, 128>}, {pipeline_mode = #tpu.pipeline_mode<synchronous>, transform_indices = @transform_2, window_bounds = array<i64: 3, 128>}, {transform_indices = @transform_3, window_bounds = array<i64: 8, 4>}]} {
    %c0 = arith.constant 0 : index
    %c0_0 = arith.constant 0 : index
    %0 = vector.load %arg1[%c0, %c0_0] : memref<8x8xf32, #tpu.memory_space<vmem>>, vector<8x8xf32>
    %c0_1 = arith.constant 0 : index
    %c0_2 = arith.constant 0 : index
    %1 = vector.load %arg2[%c0_1, %c0_2] : memref<264x128xf32, #tpu.memory_space<vmem>>, vector<8x128xf32>
    %c8 = arith.constant 8 : index
    %c0_3 = arith.constant 0 : index
    %2 = vector.load %arg2[%c8, %c0_3] : memref<264x128xf32, #tpu.memory_space<vmem>>, vector<128x128xf32>
    %c136 = arith.constant 136 : index
    %c0_4 = arith.constant 0 : index
    %3 = vector.load %arg2[%c136, %c0_4] : memref<264x128xf32, #tpu.memory_space<vmem>>, vector<128x128xf32>
    %cst = arith.constant dense<0.000000e+00> : vector<8x128xf32>
    %4 = tpu.matmul %0, %1, %cst {dimension_numbers = #tpu.dot_dimension_numbers<[1], [0], [0], [1], [0, 0, 1, 1], [], []>} : vector<8x8xf32>, vector<8x128xf32>, vector<8x128xf32> -> vector<8x128xf32>
    %c0_5 = arith.constant 0 : index
    %c0_6 = arith.constant 0 : index
    %5 = vector.load %arg3[%c0_5, %c0_6] : memref<3x128xf32, #tpu.memory_space<vmem>>, vector<1x128xf32>
    %6 = vector.broadcast %5 : vector<1x128xf32> to vector<8x128xf32>
    %7 = arith.addf %4, %6 : vector<8x128xf32>
    %cst_7 = arith.constant 0.000000e+00 : f32
    %8 = vector.broadcast %cst_7 : f32 to vector<8x128xf32>
    %9 = arith.maximumf %7, %8 : vector<8x128xf32>
    %cst_8 = arith.constant dense<0.000000e+00> : vector<8x128xf32>
    %10 = tpu.matmul %9, %2, %cst_8 {dimension_numbers = #tpu.dot_dimension_numbers<[1], [0], [0], [1], [0, 0, 1, 1], [], []>} : vector<8x128xf32>, vector<128x128xf32>, vector<8x128xf32> -> vector<8x128xf32>
    %c1 = arith.constant 1 : index
    %c0_9 = arith.constant 0 : index
    %11 = vector.load %arg3[%c1, %c0_9] : memref<3x128xf32, #tpu.memory_space<vmem>>, vector<1x128xf32>
    %12 = vector.broadcast %11 : vector<1x128xf32> to vector<8x128xf32>
    %13 = arith.addf %10, %12 : vector<8x128xf32>
    %cst_10 = arith.constant 0.000000e+00 : f32
    %14 = vector.broadcast %cst_10 : f32 to vector<8x128xf32>
    %15 = arith.maximumf %13, %14 : vector<8x128xf32>
    %cst_11 = arith.constant dense<0.000000e+00> : vector<8x128xf32>
    %16 = tpu.matmul %15, %3, %cst_11 {dimension_numbers = #tpu.dot_dimension_numbers<[1], [0], [0], [1], [0, 0, 1, 1], [], []>} : vector<8x128xf32>, vector<128x128xf32>, vector<8x128xf32> -> vector<8x128xf32>
    %17 = vector.extract_strided_slice %16 {offsets = [0, 0], sizes = [8, 4], strides = [1, 1]} : vector<8x128xf32> to vector<8x4xf32>
    %c2 = arith.constant 2 : index
    %c0_12 = arith.constant 0 : index
    %18 = vector.load %arg3[%c2, %c0_12] : memref<3x128xf32, #tpu.memory_space<vmem>>, vector<1x4xf32>
    %19 = vector.broadcast %18 : vector<1x4xf32> to vector<8x4xf32>
    %20 = arith.addf %17, %19 : vector<8x4xf32>
    %c0_13 = arith.constant 0 : index
    %c0_14 = arith.constant 0 : index
    %21 = vector.load %arg4[%c0_13, %c0_14] : memref<8x4xf32, #tpu.memory_space<vmem>>, vector<8x4xf32>
    tpu.vector_store %arg4[%c0_13, %c0_14], %20 {strides = array<i32>} : memref<8x4xf32, #tpu.memory_space<vmem>>, vector<8x4xf32>,
    return
  }
  func.func @transform_0(%arg0: i32) -> (i32, i32) {
    %c0_i32 = arith.constant 0 : i32
    %c0_i32_0 = arith.constant 0 : i32
    return %arg0, %c0_i32 : i32, i32
  }
  func.func @transform_1(%arg0: i32) -> (i32, i32) {
    %c0_i32 = arith.constant 0 : i32
    %c0_i32_0 = arith.constant 0 : i32
    %c0_i32_1 = arith.constant 0 : i32
    return %c0_i32, %c0_i32_0 : i32, i32
  }
  func.func @transform_2(%arg0: i32) -> (i32, i32) {
    %c0_i32 = arith.constant 0 : i32
    %c0_i32_0 = arith.constant 0 : i32
    %c0_i32_1 = arith.constant 0 : i32
    return %c0_i32, %c0_i32_0 : i32, i32
  }
  func.func @transform_3(%arg0: i32) -> (i32, i32) {
    %c0_i32 = arith.constant 0 : i32
    %c0_i32_0 = arith.constant 0 : i32
    return %arg0, %c0_i32 : i32, i32
  }
}

</mosaic_0001>

<bundles_post_ra>
// kernel: tpu_custom_call.1
= control target key start
LH: loop header
LB: loop body
LE: loop exit
PB: predicated region body
PF: predicated region fallthrough
CT: control target
= control target key end

     0   :  { %8 = vsyncpa [#allocation3], 0  ;;  %s621_s0 = inlined_call_operand.hbm [shape: f32[8,8], index: 0, kind: input, shape index: {}]   ;;  %s622_s1 = inlined_call_operand.hbm [shape: f32[264,128], index: 1, kind: input, shape index: {}]   ;;  %s623_s2 = inlined_call_operand.vmem [shape: f32[3,128], index: 2, kind: input, shape index: {}]   ;;  %s624_s3 = inlined_call_operand.vmem [shape: f32[8,4], index: 3, kind: output, shape index: {}]  }
   0x1   :  { %9 = vsyncpa [#allocation5], 0  ;;  %s532_s12 = smov [#allocation2]   ;;  %s533_s14 = smov [#allocation4]  }
   0x2   :  { %s16_s13 = sshll.u32 %s532_s12, 4  ;;  %s25_s15 = sshll.u32 %s533_s14, 4  ;;  %s17_s13 = int_to_ptr.vmem [resolvable:$true] %s16_s13  ;;  %s559_s15 = int_to_ptr.vmem [resolvable:$true] %s25_s15 }
   0x3   :  { %s484_s18 = scalar_lea.hbm %s621_s0, 128 }
   0x4   :  { %p485_p0 = scmp.ne.s32.totalorder %s621_s0, %s484_s18  ;;  %p488_p1 = scmp.lt.u32.totalorder %s484_s18, %s621_s0 }
   0x6   :  { %p490_p2 = pnand %p488_p1, %p485_p0 }
   0x8   :  { %493 = shalt.err (!%p490_p2)
}
   0x9   :  { %s494_s23 = scalar_lea.vmem %s17_s13, 128  ;;  %p499_p4 = scmp.lt.s32.totalorder %s17_s13, %s17_s13 }
   0xa   :  { %p495_p3 = scmp.ne.s32.totalorder %s17_s13, %s494_s23  ;;  %p500_p5 = scmp.lt.s32.totalorder %s494_s23, %s494_s23 }
   0xc   :  { %p501_p6 = por %p500_p5, %p499_p4 }
   0xe   :  { %p502_p7 = pnand %p501_p6, %p495_p3 }
  0x10   :  { %505 = shalt.err (!%p502_p7)
}
  0x11   :  { %19 = dma.hbm_to_vmem [thread:$0]  %s621_s0, 128, %s17_s13, [#allocation3]  }
  0x12   :  { %s506_s28 = scalar_lea.hbm %s622_s1, 4224 }
  0x13   :  { %p507_p8 = scmp.ne.s32.totalorder %s622_s1, %s506_s28  ;;  %p510_p9 = scmp.lt.u32.totalorder %s506_s28, %s622_s1 }
  0x15   :  { %p512_p10 = pnand %p510_p9, %p507_p8 }
  0x17   :  { %515 = shalt.err (!%p512_p10)
}
  0x18   :  { %s516_s6 = scalar_lea.vmem %s559_s15, 4224  ;;  %p521_p12 = scmp.lt.s32.totalorder %s559_s15, %s559_s15 }
  0x19   :  { %p517_p11 = scmp.ne.s32.totalorder %s559_s15, %s516_s6  ;;  %p522_p13 = scmp.lt.s32.totalorder %s516_s6, %s516_s6 }
  0x1b   :  { %p523_p0 = por %p522_p13, %p521_p12 }
  0x1d   :  { %p524_p1 = pnand %p523_p0, %p517_p11 }
  0x1f   :  { %527 = shalt.err (!%p524_p1)
}
  0x20   :  { %s534_s0 = smov 128   ;;  %s535_s7 = smov 8  }
  0x21   :  { %31 = dma.hbm_to_vmem [thread:$0]  %s622_s1, 4224, %s559_s15, [#allocation5], %s534_s0, %s534_s0, %s535_s7  }
  0x22   :  { %528 = dma.done.wait [#allocation3], 128  }
  0x23   :  { %529 = vsyncadd [#allocation3], 4294967168 }
  0x24   :  { %530 = dma.done.wait [#allocation5], 4224  }
  0x25   :  { %531 = vsyncadd [#allocation5], 4294963072  ;;  %v536_v0 = vmov 0.0   ;;  %vm537_vm0 = vmmov 0   ;;  %v538_v1 = vmov 0.0|0.0   ;;  %vm79_vm1 = vcmask 64512  }
  0x26   :  { %354 = vmatprep.subr.mxu0 %v536_v0  ;;  %356 = vmatprep.mubr.msk.f32.mxu0 %vm537_vm0, %v536_v0  ;;  %v41_v2 = vld [vmem:[#allocation4] sm:$0xff]  ;;  %v40_v3 = vld [vmem:[#allocation2] sm:$0xff]  ;;  %v42_v4 = vld [vmem:[#allocation4 + $0x8] sm:$0xff]  ;;  %vm306_vm2 = vcmask 31744  }
  0x27   :  { %429 = vmatprep.subr.bf16.mxu1 %v538_v1  ;;  %391 = vmatprep.mubr.msk.f32.mxu1 %vm537_vm0, %v536_v0  ;;  %v43_v5 = vld [vmem:[#allocation4 + $0x10] sm:$0xff]  ;;  %v44_v6 = vld [vmem:[#allocation4 + $0x18] sm:$0xff]  ;;  %v45_v7 = vld [vmem:[#allocation4 + $0x20] sm:$0xff] }
  0x28   :  { %355 = vmatpush3.msra.mxu0 %v41_v2  ;;  %v430_v8 = vpack.c.bf16 %v43_v5, %v42_v4  ;;  %v433_v9 = vpack.c.bf16 %v45_v7, %v44_v6  ;;  %v46_v10 = vld [vmem:[#allocation4 + $0x28] sm:$0xff]  ;;  %v47_v11 = vld [vmem:[#allocation4 + $0x30] sm:$0xff]  ;;  %v48_v13 = vld [vmem:[#allocation4 + $0x38] sm:$0xff] }
  0x29   :  { %357 = vmatmul.mubr.msk.f32.vlgmr.msra.gmra.mrb[0].mxu0 %vm79_vm1, %v40_v3  ;;  %453 = vmatprep.subr.bf16.mxu0 %v538_v1  ;;  %v436_v12 = vpack.c.bf16 %v47_v11, %v46_v10  ;;  %v49_v14 = vld [vmem:[#allocation4 + $0x40] sm:$0xff]  ;;  %v50_v16 = vld [vmem:[#allocation4 + $0x48] sm:$0xff]  ;;  %v51_v17 = vld [vmem:[#allocation4 + $0x50] sm:$0xff] }
  0x2a   :  { %426 = vmatprep.mubr.msk.f32.mxu0 %vm537_vm0, %v536_v0  ;;  %431 = vmatpush3.bf16.msra.mxu1 %v430_v8  ;;  %v439_v15 = vpack.c.bf16 %v49_v14, %v48_v13  ;;  %v442_v18 = vpack.c.bf16 %v51_v17, %v50_v16  ;;  %v52_v19 = vld [vmem:[#allocation4 + $0x58] sm:$0xff]  ;;  %v53_v20 = vld [vmem:[#allocation4 + $0x60] sm:$0xff]  ;;  %v54_v22 = vld [vmem:[#allocation4 + $0x68] sm:$0xff] }
  0x2b   :  { %432 = vmatprep.subr.bf16.mxu1 %v538_v1  ;;  %v445_v21 = vpack.c.bf16 %v53_v20, %v52_v19  ;;  %v55_v23 = vld [vmem:[#allocation4 + $0x70] sm:$0xff]  ;;  %v56_v25 = vld [vmem:[#allocation4 + $0x78] sm:$0xff]  ;;  %v57_v26 = vld [vmem:[#allocation4 + $0x80] sm:$0xff] }
  0x2c   :  { %v448_v24 = vpack.c.bf16 %v55_v23, %v54_v22  ;;  %v451_v27 = vpack.c.bf16 %v57_v26, %v56_v25  ;;  %v58_v28 = vld [vmem:[#allocation4 + $0x88] sm:$0xff]  ;;  %v59_v29 = vld [vmem:[#allocation4 + $0x90] sm:$0xff]  ;;  %v60_v30 = vld [vmem:[#allocation4 + $0x98] sm:$0xff] }
  0x2d   :  { %v454_v31 = vpack.c.bf16 %v59_v29, %v58_v28  ;;  %v61_v32 = vld [vmem:[#allocation4 + $0xa0] sm:$0xff]  ;;  %v62_v34 = vld [vmem:[#allocation4 + $0xa8] sm:$0xff]  ;;  %v63_v35 = vld [vmem:[#allocation4 + $0xb0] sm:$0xff] }
  0x2e   :  { %434 = vmatpush3.bf16.msra.mxu1 %v433_v9  ;;  %v457_v33 = vpack.c.bf16 %v61_v32, %v60_v30  ;;  %v460_v36 = vpack.c.bf16 %v63_v35, %v62_v34  ;;  %v64_v37 = vld [vmem:[#allocation4 + $0xb8] sm:$0xff]  ;;  %v65_v38 = vld [vmem:[#allocation4 + $0xc0] sm:$0xff]  ;;  %v66_v40 = vld [vmem:[#allocation4 + $0xc8] sm:$0xff] }
  0x2f   :  { %435 = vmatprep.subr.bf16.mxu1 %v538_v1  ;;  %455 = vmatpush3.bf16.msra.mxu0 %v454_v31  ;;  %v463_v39 = vpack.c.bf16 %v65_v38, %v64_v37  ;;  %v67_v41 = vld [vmem:[#allocation4 + $0xd0] sm:$0xff]  ;;  %v68_v43 = vld [vmem:[#allocation4 + $0xd8] sm:$0xff]  ;;  %v69_v44 = vld [vmem:[#allocation4 + $0xe0] sm:$0xff] }
  0x30   :  { %456 = vmatprep.subr.bf16.mxu0 %v538_v1  ;;  %v466_v42 = vpack.c.bf16 %v67_v41, %v66_v40  ;;  %v469_v45 = vpack.c.bf16 %v69_v44, %v68_v43  ;;  %v70_v46 = vld [vmem:[#allocation4 + $0xe8] sm:$0xff]  ;;  %v71_v47 = vld [vmem:[#allocation4 + $0xf0] sm:$0xff]  ;;  %v72_v54 = vld [vmem:[#allocation4 + $0xf8] sm:$0xff] }
  0x31   :  { %v472_v48 = vpack.c.bf16 %v71_v47, %v70_v46  ;;  %v314_v49 = vld [vmem:[%s623_s2] ss:$0 sm:$0xff]  ;;  %v73_v55 = vld [vmem:[#allocation4 + $0x100] sm:$0xff]  ;;  %v316_v57 = vld [vmem:[%s623_s2 + $0x1] ss:$0 sm:$0xff] }
  0x32   :  { %437 = vmatpush3.bf16.msra.mxu1 %v436_v12  ;;  %v475_v56 = vpack.c.bf16 %v73_v55, %v72_v54  ;;  %v317_v62 = vld [vmem:[%s623_s2 + $0x2] ss:$0 sm:$0xff] }
  0x33   :  { %438 = vmatprep.subr.bf16.mxu1 %v538_v1  ;;  %458 = vmatpush3.bf16.msra.mxu0 %v457_v33 }
  0x34   :  { %459 = vmatprep.subr.bf16.mxu0 %v538_v1 }
  0x36   :  { %440 = vmatpush3.bf16.msra.mxu1 %v439_v15 }
  0x37   :  { %441 = vmatprep.subr.bf16.mxu1 %v538_v1  ;;  %461 = vmatpush3.bf16.msra.mxu0 %v460_v36 }
  0x38   :  { %462 = vmatprep.subr.bf16.mxu0 %v538_v1 }
  0x3a   :  { %443 = vmatpush3.bf16.msra.mxu1 %v442_v18 }
  0x3b   :  { %444 = vmatprep.subr.bf16.mxu1 %v538_v1  ;;  %464 = vmatpush3.bf16.msra.mxu0 %v463_v39 }
  0x3c   :  { %465 = vmatprep.subr.bf16.mxu0 %v538_v1 }
  0x3e   :  { %446 = vmatpush3.bf16.msra.mxu1 %v445_v21 }
  0x3f   :  { %447 = vmatprep.subr.bf16.mxu1 %v538_v1  ;;  %467 = vmatpush3.bf16.msra.mxu0 %v466_v42 }
  0x40   :  { %468 = vmatprep.subr.bf16.mxu0 %v538_v1 }
  0x42   :  { %449 = vmatpush3.bf16.msra.mxu1 %v448_v24 }
  0x43   :  { %450 = vmatprep.subr.bf16.mxu1 %v538_v1  ;;  %470 = vmatpush3.bf16.msra.mxu0 %v469_v45 }
  0x44   :  { %471 = vmatprep.subr.bf16.mxu0 %v538_v1 }
  0x46   :  { %452 = vmatpush3.bf16.msra.mxu1 %v451_v27 }
  0x47   :  { %473 = vmatpush3.bf16.msra.mxu0 %v472_v48 }
  0x48   :  { %474 = vmatprep.subr.bf16.mxu0 %v538_v1 }
  0x4b   :  { %476 = vmatpush3.bf16.msra.mxu0 %v475_v56 }
  0xfc   :  { %v149_v50 = vpop.f32.mrb[0].mxu0 }
  0xfd   :  { %v150_v51 = vadd.f32 %v314_v49, %v149_v50  ;;  %v358_v52 = vpop.f32.mrb[1].mxu0 }
  0xff   :  { %v153_v53 = vmax.f32 %v150_v51, 0.0 }
 0x101   :  { %392 = vmatmul.mubr.f32.vlgmr.msra.gmra.mrb[0].mxu1 %v153_v53 }
 0x1d4   :  { %v225_v58 = vpop.f32.mrb[0].mxu1 }
 0x1d5   :  { %v226_v59 = vadd.f32 %v316_v57, %v225_v58  ;;  %v393_v60 = vpop.f32.mrb[1].mxu1 }
 0x1d7   :  { %v229_v61 = vmax.f32 %v226_v59, 0.0 }
 0x1d9   :  { %427 = vmatmul.mubr.f32.vlgmr.msra.gmra.mrb[2].mxu0 %v229_v61 }
 0x2ac   :  { %v296_v63 = vpop.f32.mrb[2].mxu0 }
 0x2ad   :  { %v305_v0 = vadd.f32 %v317_v62, %v296_v63  ;;  %v428_v1 = vpop.f32.mrb[3].mxu0 }
 0x2af   :  { %307 = vst.msk [vmem:[%s624_s3] sm:$0xff] %vm306_vm2, %v305_v0 }
 0x2b0   :  { %312 = vsyncpa [#allocation3], 1 }
 0x2b1   :  { %313 = vsyncpa [#allocation5], 1 }

</bundles_post_ra>
